<compile_context>
chip_gen: v5e
topology: v5e:2x2
jax: 0.10.0
libtpu: 0.0.40
codegen_flags: <defaults>
</compile_context>

<pallas_src>
import functools

import jax
import jax.numpy as jnp
from jax.experimental import pallas as pl
from jax.experimental.pallas import tpu as pltpu

LANE = 128
SUBLANE = 8
ALIGN = SUBLANE * LANE              # 1024 lanes == one (8,128) f32 vreg tile
TB_DEFAULT = 256 * 1024             # lanes/step -> ~6 MiB double-buffered VMEM


def _round_up(n, m):
    return -(-n // m) * m


def mlp_kernel(params_ref, x_ref, o_ref):
    # params_ref (SMEM, f32[13]) layout:
    #   w1 row-major (in=2, out=3): [0:6]   -> w1[i, j] = params[i*3 + j]
    #   b1:                         [6:9]
    #   w2 (3,):                    [9:12]
    #   b2:                         [12]
    # x_ref: (2, R, 128) f32, batch dense on sublanes+lanes.
    x0 = x_ref[0]                       # (R, 128)
    x1 = x_ref[1]                       # (R, 128)

    # Hidden layer: h_j = relu(x0 * w1[0,j] + x1 * w1[1,j] + b1[j])
    h0 = jnp.maximum(x0 * params_ref[0] + x1 * params_ref[3] + params_ref[6], 0.0)
    h1 = jnp.maximum(x0 * params_ref[1] + x1 * params_ref[4] + params_ref[7], 0.0)
    h2 = jnp.maximum(x0 * params_ref[2] + x1 * params_ref[5] + params_ref[8], 0.0)

    # Output layer: y = h0*w2[0] + h1*w2[1] + h2*w2[2] + b2
    y = h0 * params_ref[9] + h1 * params_ref[10] + h2 * params_ref[11] + params_ref[12]
    o_ref[...] = y.astype(o_ref.dtype)


@functools.partial(jax.jit, static_argnames=("tb",))
def rede_neural_forward(x, w1, b1, w2, b2, *, tb=TB_DEFAULT):
    """x: (B, 2) f32. Weights stored as (in, out): y = relu(x @ w1 + b1) @ w2 + b2.

    Matches PyTorch nn.Linear semantics (which computes x @ W.T + b) when w1/w2
    are the transposed PyTorch weight matrices.
    """
    B = x.shape[0]

    # --- tile selection (all Python ints; shapes are static under jit) -------
    # Align to whole (8,128) vreg tiles and clamp to the (padded) batch.
    tile = max(ALIGN, min(_round_up(tb, ALIGN), _round_up(B, ALIGN)))
    b_pad = _round_up(B, tile)
    # Prefer >= 2 grid steps when the batch allows it so the "parallel" axis
    # can shard across both TensorCores on v7x.
    if b_pad // tile == 1 and b_pad >= 2 * ALIGN:
        tile = _round_up(b_pad // 2, ALIGN)
        b_pad = _round_up(B, tile)
    n_rows = b_pad // LANE
    rows_per_tile = tile // LANE        # multiple of 8
    grid = (b_pad // tile,)

    # --- layout: one fused copy pass into the sublane/lane-dense slab --------
    xf = x.astype(jnp.float32)
    if b_pad != B:
        # TODO(synk): handle the ragged tail in-kernel (masked store) instead
        # of padding; under jit this pad fuses with the transpose below.
        xf = jnp.pad(xf, ((0, b_pad - B), (0, 0)))
    x_t = xf.T.reshape(2, n_rows, LANE)

    # Pack all 13 parameters into one flat f32 vector (SMEM scalar prefetch).
    params = jnp.concatenate([
        jnp.asarray(w1, jnp.float32).reshape(-1),
        jnp.asarray(b1, jnp.float32).reshape(-1),
        jnp.asarray(w2, jnp.float32).reshape(-1),
        jnp.asarray(b2, jnp.float32).reshape(-1),
    ])

    out = pl.pallas_call(
        mlp_kernel,
        out_shape=jax.ShapeDtypeStruct((n_rows, LANE), jnp.float32),
        grid_spec=pltpu.PrefetchScalarGridSpec(
            num_scalar_prefetch=1,
            grid=grid,
            in_specs=[pl.BlockSpec((2, rows_per_tile, LANE),
                                   lambda i, p: (0, i, 0))],
            out_specs=pl.BlockSpec((rows_per_tile, LANE),
                                   lambda i, p: (i, 0)),
        ),
        compiler_params=pltpu.CompilerParams(
            dimension_semantics=("parallel",)),
        cost_estimate=pl.CostEstimate(
            flops=21 * b_pad, transcendentals=0, bytes_accessed=12 * b_pad),
    )(params, x_t)

    # (n_rows, 128) -> (b_pad,) is a free contiguous reshape; slice off the
    # padded lanes and add the trailing feature dim.  No transpose-back pass.
    return out.reshape(b_pad)[:B, None]


def init_params(key):
    # Deterministic init mimicking nn.Linear's uniform(-1/sqrt(fan_in), 1/sqrt(fan_in)).
    k1, k2, k3, k4 = jax.random.split(key, 4)
    bound1 = 1.0 / jnp.sqrt(2.0)
    bound2 = 1.0 / jnp.sqrt(3.0)
    w1 = jax.random.uniform(k1, (2, 3), jnp.float32, -bound1, bound1)
    b1 = jax.random.uniform(k2, (3,), jnp.float32, -bound1, bound1)
    w2 = jax.random.uniform(k3, (3, 1), jnp.float32, -bound2, bound2)
    b2 = jax.random.uniform(k4, (1,), jnp.float32, -bound2, bound2)
    return w1, b1, w2, b2


if __name__ == "__main__":
    key = jax.random.PRNGKey(0)
    kx, kp = jax.random.split(key)

    # B=2500 exercises: non-multiple-of-1024 padding, the 2-step grid split
    # (megacore path), and dense (R,128) tiles with R a multiple of 8.
    B = 2500
    x = jax.random.normal(kx, (B, 2), jnp.float32)
    w1, b1, w2, b2 = init_params(kp)

    out = rede_neural_forward(x, w1, b1, w2, b2)
    jax.block_until_ready(out)

    # Pure-JAX reference (same math as the PyTorch module).
    ref = jnp.maximum(x @ w1 + b1, 0.0) @ w2 + b2
    assert out.shape == (B, 1), out.shape
    assert jnp.allclose(out, ref, atol=1e-5, rtol=1e-5)
    print("KERNEL_OK")
</pallas_src>

<mosaic_0001>
module attributes {stable_mosaic.version = 11 : i64} {
  func.func @mlp_kernel(%arg0: i32, %arg1: memref<13xf32, #tpu.memory_space<smem>>, %arg2: memref<2x16x128xf32, #tpu.memory_space<vmem>>, %arg3: memref<16x128xf32, #tpu.memory_space<vmem>>) attributes {dimension_semantics = [#tpu.dimension_semantics<parallel>], iteration_bounds = array<i64: 2>, scalar_prefetch = 1 : i64, scratch_operands = 0 : i64, tpu.core_type = #tpu.core_type<tc>, window_params = [{transform_indices = @transform_0, window_bounds = array<i64: 2, 16, 128>}, {transform_indices = @transform_1, window_bounds = array<i64: 16, 128>}]} {
    %c0 = arith.constant 0 : index
    %c0_0 = arith.constant 0 : index
    %c0_1 = arith.constant 0 : index
    %0 = vector.load %arg2[%c0, %c0_0, %c0_1] : memref<2x16x128xf32, #tpu.memory_space<vmem>>, vector<1x16x128xf32>
    %1 = vector.shape_cast %0 : vector<1x16x128xf32> to vector<16x128xf32>
    %c1 = arith.constant 1 : index
    %c0_2 = arith.constant 0 : index
    %c0_3 = arith.constant 0 : index
    %2 = vector.load %arg2[%c1, %c0_2, %c0_3] : memref<2x16x128xf32, #tpu.memory_space<vmem>>, vector<1x16x128xf32>
    %3 = vector.shape_cast %2 : vector<1x16x128xf32> to vector<16x128xf32>
    %c0_4 = arith.constant 0 : index
    %4 = memref.load %arg1[%c0_4] : memref<13xf32, #tpu.memory_space<smem>>
    %5 = vector.broadcast %4 : f32 to vector<16x128xf32>
    %6 = arith.mulf %1, %5 : vector<16x128xf32>
    %c3 = arith.constant 3 : index
    %7 = memref.load %arg1[%c3] : memref<13xf32, #tpu.memory_space<smem>>
    %8 = vector.broadcast %7 : f32 to vector<16x128xf32>
    %9 = arith.mulf %3, %8 : vector<16x128xf32>
    %10 = arith.addf %6, %9 : vector<16x128xf32>
    %c6 = arith.constant 6 : index
    %11 = memref.load %arg1[%c6] : memref<13xf32, #tpu.memory_space<smem>>
    %12 = vector.broadcast %11 : f32 to vector<16x128xf32>
    %13 = arith.addf %10, %12 : vector<16x128xf32>
    %cst = arith.constant 0.000000e+00 : f32
    %14 = vector.broadcast %cst : f32 to vector<16x128xf32>
    %15 = arith.maximumf %13, %14 : vector<16x128xf32>
    %c1_5 = arith.constant 1 : index
    %16 = memref.load %arg1[%c1_5] : memref<13xf32, #tpu.memory_space<smem>>
    %17 = vector.broadcast %16 : f32 to vector<16x128xf32>
    %18 = arith.mulf %1, %17 : vector<16x128xf32>
    %c4 = arith.constant 4 : index
    %19 = memref.load %arg1[%c4] : memref<13xf32, #tpu.memory_space<smem>>
    %20 = vector.broadcast %19 : f32 to vector<16x128xf32>
    %21 = arith.mulf %3, %20 : vector<16x128xf32>
    %22 = arith.addf %18, %21 : vector<16x128xf32>
    %c7 = arith.constant 7 : index
    %23 = memref.load %arg1[%c7] : memref<13xf32, #tpu.memory_space<smem>>
    %24 = vector.broadcast %23 : f32 to vector<16x128xf32>
    %25 = arith.addf %22, %24 : vector<16x128xf32>
    %cst_6 = arith.constant 0.000000e+00 : f32
    %26 = vector.broadcast %cst_6 : f32 to vector<16x128xf32>
    %27 = arith.maximumf %25, %26 : vector<16x128xf32>
    %c2 = arith.constant 2 : index
    %28 = memref.load %arg1[%c2] : memref<13xf32, #tpu.memory_space<smem>>
    %29 = vector.broadcast %28 : f32 to vector<16x128xf32>
    %30 = arith.mulf %1, %29 : vector<16x128xf32>
    %c5 = arith.constant 5 : index
    %31 = memref.load %arg1[%c5] : memref<13xf32, #tpu.memory_space<smem>>
    %32 = vector.broadcast %31 : f32 to vector<16x128xf32>
    %33 = arith.mulf %3, %32 : vector<16x128xf32>
    %34 = arith.addf %30, %33 : vector<16x128xf32>
    %c8 = arith.constant 8 : index
    %35 = memref.load %arg1[%c8] : memref<13xf32, #tpu.memory_space<smem>>
    %36 = vector.broadcast %35 : f32 to vector<16x128xf32>
    %37 = arith.addf %34, %36 : vector<16x128xf32>
    %cst_7 = arith.constant 0.000000e+00 : f32
    %38 = vector.broadcast %cst_7 : f32 to vector<16x128xf32>
    %39 = arith.maximumf %37, %38 : vector<16x128xf32>
    %c9 = arith.constant 9 : index
    %40 = memref.load %arg1[%c9] : memref<13xf32, #tpu.memory_space<smem>>
    %41 = vector.broadcast %40 : f32 to vector<16x128xf32>
    %42 = arith.mulf %15, %41 : vector<16x128xf32>
    %c10 = arith.constant 10 : index
    %43 = memref.load %arg1[%c10] : memref<13xf32, #tpu.memory_space<smem>>
    %44 = vector.broadcast %43 : f32 to vector<16x128xf32>
    %45 = arith.mulf %27, %44 : vector<16x128xf32>
    %46 = arith.addf %42, %45 : vector<16x128xf32>
    %c11 = arith.constant 11 : index
    %47 = memref.load %arg1[%c11] : memref<13xf32, #tpu.memory_space<smem>>
    %48 = vector.broadcast %47 : f32 to vector<16x128xf32>
    %49 = arith.mulf %39, %48 : vector<16x128xf32>
    %50 = arith.addf %46, %49 : vector<16x128xf32>
    %c12 = arith.constant 12 : index
    %51 = memref.load %arg1[%c12] : memref<13xf32, #tpu.memory_space<smem>>
    %52 = vector.broadcast %51 : f32 to vector<16x128xf32>
    %53 = arith.addf %50, %52 : vector<16x128xf32>
    %c0_8 = arith.constant 0 : index
    %c0_9 = arith.constant 0 : index
    %54 = vector.load %arg3[%c0_8, %c0_9] : memref<16x128xf32, #tpu.memory_space<vmem>>, vector<16x128xf32>
    tpu.vector_store %arg3[%c0_8, %c0_9], %53 {strides = array<i32>} : memref<16x128xf32, #tpu.memory_space<vmem>>, vector<16x128xf32>,
    return
  }
  func.func @transform_0(%arg0: i32, %arg1: memref<13xf32, #tpu.memory_space<smem>>) -> (i32, i32, i32) {
    %c0_i32 = arith.constant 0 : i32
    %c0_i32_0 = arith.constant 0 : i32
    %c0_i32_1 = arith.constant 0 : i32
    return %c0_i32, %arg0, %c0_i32_0 : i32, i32, i32
  }
  func.func @transform_1(%arg0: i32, %arg1: memref<13xf32, #tpu.memory_space<smem>>) -> (i32, i32) {
    %c0_i32 = arith.constant 0 : i32
    %c0_i32_0 = arith.constant 0 : i32
    return %arg0, %c0_i32 : i32, i32
  }
}

</mosaic_0001>

<bundles_post_ra>
// kernel: rede_neural_forward.1
= control target key start
LH: loop header
LB: loop body
LE: loop exit
PB: predicated region body
PF: predicated region fallthrough
CT: control target
= control target key end

     0   :  { %s404_s12 = smov [#allocation3]   ;;  %s496_s0 = inlined_call_operand.vmem [shape: f32[13], index: 0, kind: input, shape index: {}]   ;;  %s497_s1 = inlined_call_operand.vmem [shape: f32[2,32,128], index: 1, kind: input, shape index: {}]   ;;  %s498_s2 = inlined_call_operand.vmem [shape: f32[32,128], index: 2, kind: output, shape index: {}]  }
   0x1   :  { %s8_s11 = sshll.u32 %s496_s0, 4  ;;  %s9_s11 = int_to_ptr.vmem [resolvable:$true] %s8_s11 }
   0x2   :  { %11 = dma.vmem_to_smem %s9_s11, 16, %s404_s12, [#allocation2] }
   0x3   :  { %390 = dma.done.wait [#allocation2], 16 }
   0x4   :  { %391 = vsyncadd [#allocation2], 4294967280 }
   0x5   :  { %14 = sfence }
   0x6   :  { %s423_s13 = smov 0   ;;  %s425_s14 = smov 0  }
   0x7   :  { %s427_s15 = smov 0  }
   0x8 LB: > { %s313_s0 = sadd.s32 4294967295, %s402_s15   ;;  %s440_s16 = sadd.s32 1, %s402_s15   ;;  %s402_s15 = sphi %s427_s15, %s501_s15   ;;  %s398_s14 = sphi %s425_s14, %s500_s14   ;;  %s394_s13 = sphi %s423_s13, %s499_s13  }
   0x9   : > { %s24_s17 = ssub.s32 %s402_s15, %s440_s16  ;;  %s27_s18 = sadd.s32 1, %s398_s14 }
   0xa   : > { %p25_p0 = scmp.eq.s32.totalorder %s24_s17, 0  ;;  %p34_p1 = scmp.ne.s32.totalorder %s398_s14, %s394_s13 }
   0xb   : > { %p35_p2 = scmp.eq.s32.totalorder %s402_s15, 0  ;;  %p316_p4 = scmp.ge.s32.totalorder %s402_s15, 2 }
   0xc   : > { %s449_s19 = scalar_select %p25_p0, %s398_s14, %s27_s18  }
   0xd   : > { %p36_p3 = por %p35_p2, %p34_p1  ;;  %86 = sbr.rel (%p316_p4) target bundleno = 26 (0x1a), region = 16 }
  0x12   : > { %89 = sbr.rel (!%p36_p3) target bundleno = 26 (0x1a), region = 20  ;;  %s91_s20 = sand.u32 (%p36_p3), 1, %s398_s14  }
  0x13   : > { %s340_s21 = sshll.u32 (%p36_p3), %s402_s15, 4  ;;  %s317_s22 = sshll.u32 (%p36_p3), %s91_s20, 5 }
  0x14   : > { %s96_s25 = scalar_lea.vmem (%p36_p3), %s497_s1, %s340_s21  ;;  %s93_s26 = scalar_lea.vmem (%p36_p3), [#allocation4], %s317_s22 }
  0x15   : > { %v131_v0 = vld [vmem:[%s96_s25] sm:$0xff] (%p36_p3)  ;;  %v133_v1 = vld [vmem:[%s96_s25 + $0x8] sm:$0xff] (%p36_p3) }
  0x16   : > { %v135_v2 = vld [vmem:[%s96_s25 + $0x20] sm:$0xff] (%p36_p3)  ;;  %132 = vst [vmem:[%s93_s26] sm:$0xff] (%p36_p3), %v131_v0  ;;  %v137_v3 = vld [vmem:[%s96_s25 + $0x28] sm:$0xff] (%p36_p3) }
  0x17   : > { %134 = vst [vmem:[%s93_s26 + $0x8] sm:$0xff] %v133_v1 }
  0x18   : > { %136 = vst [vmem:[%s93_s26 + $0x10] sm:$0xff] %v135_v2 }
  0x19   : > { %138 = vst [vmem:[%s93_s26 + $0x18] sm:$0xff] %v137_v3 }
  0x1a PF: > { %p320_p5 = scmp.ge.s32.totalorder %s402_s15, 1  ;;  %p143_p6 = scmp.lt.s32.totalorder %s402_s15, 3 }
  0x1c   : > { %p144_p7 = pnand %p320_p5, %p143_p6 }
  0x1d   : > { %s150_s27 = sand.u32 (!%p144_p7), 1, %s394_s13   ;;  %s181_s29 = sld [smem:[#allocation3]] (!%p144_p7) }
  0x1e   : > { %147 = sbr.rel (%p144_p7) target bundleno = 61 (0x3d), region = 58  ;;  %s321_s28 = sshll.u32 (!%p144_p7), %s150_s27, 5 }
  0x1f   : > { %s326_s30 = sld [smem:[#allocation3 + $0x3]] (!%p144_p7)  ;;  %s152_s4 = scalar_lea.vmem (!%p144_p7), [#allocation4], %s321_s28 }
  0x20   : > { %s327_s3 = sld [smem:[#allocation3 + $0x6]] (!%p144_p7)  ;;  %s470_s13 = sshll.u32 (!%p144_p7), %s313_s0, 1 }
  0x21   : > { %s328_s5 = sld [smem:[#allocation3 + $0x1]] (!%p144_p7)  ;;  %p171_p8 = scmp.lt.s32.totalorder (!%p144_p7), %s470_s13, 3 }
  0x22   : > { %s329_s6 = sld [smem:[#allocation3 + $0x4]] (!%p144_p7) }
  0x23   : > { %v176_v4 = vld [vmem:[%s152_s4] sm:$0xff]  ;;  %v177_v5 = vld [vmem:[%s152_s4 + $0x8] sm:$0xff]  ;;  %v324_v6 = vld [vmem:[%s152_s4 + $0x10] sm:$0xff]  ;;  %v182_v8 = vstv %s181_s29  ;;  %s460_s7 = sld [smem:[#allocation3 + $0x7]]  ;;  %s503_s13 = smov (!%p171_p8, %s470_s13), 3 }
  0x24   : > { %v325_v7 = vld [vmem:[%s152_s4 + $0x18] sm:$0xff]  ;;  %v183_v9 = vmul.f32 %v182_v8, %v176_v4  ;;  %v184_v10 = vmul.f32 %v182_v8, %v177_v5  ;;  %s331_s8 = sld [smem:[#allocation3 + $0x2]]  ;;  %s323_s0 = sshll.u32 %s503_s13, 3 }
  0x25   : > { %v186_v11 = vstv %s326_s30  ;;  %s332_s9 = sld [smem:[#allocation3 + $0x5]]  ;;  %s174_s21 = scalar_lea.vmem %s498_s2, %s323_s0 }
  0x26   : > { %v187_v12 = vmul.f32 %v324_v6, %v186_v11  ;;  %v188_v13 = vmul.f32 %v325_v7, %v186_v11  ;;  %s462_s10 = sld [smem:[#allocation3 + $0x8]]  ;;  %v192_v14 = vstv %s327_s3 }
  0x27   : > { %v198_v15 = vstv %s328_s5  ;;  %s464_s11 = sld [smem:[#allocation3 + $0x9]] }
  0x28   : > { %v189_v16 = vadd.f32 %v187_v12, %v183_v9  ;;  %v190_v17 = vadd.f32 %v188_v13, %v184_v10  ;;  %v199_v18 = vmul.f32 %v198_v15, %v176_v4  ;;  %v200_v19 = vmul.f32 %v198_v15, %v177_v5  ;;  %s466_s12 = sld [smem:[#allocation3 + $0xa]] }
  0x29   : > { %v202_v20 = vstv %s329_s6  ;;  %s472_s17 = sld [smem:[#allocation3 + $0xb]]  ;;  %v208_v25 = vstv %s460_s7 }
  0x2a   : > { %v193_v21 = vadd.f32 %v192_v14, %v189_v16  ;;  %v194_v22 = vadd.f32 %v192_v14, %v190_v17  ;;  %v203_v23 = vmul.f32 %v324_v6, %v202_v20  ;;  %v204_v24 = vmul.f32 %v325_v7, %v202_v20  ;;  %s337_s15 = sld [smem:[#allocation3 + $0xc]] }
  0x2b   : > { %v214_v26 = vstv %s331_s8  ;;  %v218_v27 = vstv %s332_s9 }
  0x2c   : > { %v195_v28 = vmax.f32 %v193_v21, 0.0  ;;  %v196_v29 = vmax.f32 %v194_v22, 0.0  ;;  %v205_v30 = vadd.f32 %v203_v23, %v199_v18  ;;  %v206_v31 = vadd.f32 %v204_v24, %v200_v19 }
  0x2d   : > { %v215_v32 = vmul.f32 %v214_v26, %v176_v4  ;;  %v216_v33 = vmul.f32 %v214_v26, %v177_v5  ;;  %v219_v34 = vmul.f32 %v324_v6, %v218_v27  ;;  %v220_v35 = vmul.f32 %v325_v7, %v218_v27 }
  0x2e   : > { %v209_v36 = vadd.f32 %v208_v25, %v205_v30  ;;  %v210_v37 = vadd.f32 %v208_v25, %v206_v31  ;;  %v224_v38 = vstv %s462_s10  ;;  %v230_v39 = vstv %s464_s11 }
  0x2f   : > { %v221_v40 = vadd.f32 %v219_v34, %v215_v32  ;;  %v222_v41 = vadd.f32 %v220_v35, %v216_v33  ;;  %v231_v42 = vmul.f32 %v230_v39, %v195_v28  ;;  %v232_v45 = vmul.f32 %v230_v39, %v196_v29 }
  0x30   : > { %v211_v43 = vmax.f32 %v209_v36, 0.0  ;;  %v212_v44 = vmax.f32 %v210_v37, 0.0  ;;  %v234_v46 = vstv %s466_s12  ;;  %v240_v51 = vstv %s472_s17 }
  0x31   : > { %v225_v47 = vadd.f32 %v224_v38, %v221_v40  ;;  %v226_v48 = vadd.f32 %v224_v38, %v222_v41  ;;  %v246_v58 = vstv %s337_s15 }
  0x32   : > { %v235_v49 = vmul.f32 %v234_v46, %v211_v43  ;;  %v236_v50 = vmul.f32 %v234_v46, %v212_v44 }
  0x33   : > { %v227_v52 = vmax.f32 %v225_v47, 0.0  ;;  %v228_v53 = vmax.f32 %v226_v48, 0.0 }
  0x34   : > { %v237_v54 = vadd.f32 %v235_v49, %v231_v42  ;;  %v238_v55 = vadd.f32 %v236_v50, %v232_v45 }
  0x35   : > { %v241_v56 = vmul.f32 %v240_v51, %v227_v52  ;;  %v242_v57 = vmul.f32 %v240_v51, %v228_v53 }
  0x37   : > { %v243_v59 = vadd.f32 %v241_v56, %v237_v54  ;;  %v244_v60 = vadd.f32 %v242_v57, %v238_v55 }
  0x39   : > { %v247_v61 = vadd.f32 %v246_v58, %v243_v59  ;;  %v248_v62 = vadd.f32 %v246_v58, %v244_v60 }
  0x3b   : > { %249 = vst [vmem:[%s174_s21] sm:$0xff] %v247_v61 }
  0x3c   : > { %250 = vst [vmem:[%s174_s21 + $0x8] sm:$0xff] %v248_v62 }
  0x3d PF: > { %p17_p9 = scmp.ge.s32.totalorder %s440_s16, 4   ;;  %s499_s13 = smov %s398_s14 }
  0x3e   : > { %s500_s14 = smov %s449_s19  ;;  %s501_s15 = smov %s440_s16 }
  0x3f   :  { %19 = sbr.rel (!%p17_p9) target bundleno = 8 (0x8), region = 98 }

</bundles_post_ra>
